<compile_context>
chip_gen: v6e
topology: v6e:2x2x1
jax: 0.10.0
libtpu: 0.0.40
codegen_flags: <defaults>
</compile_context>

<pallas_src>
import math
from functools import partial
from typing import List, NamedTuple, Optional

import jax
import jax.numpy as jnp
from jax.experimental import pallas as pl
from jax.experimental.pallas import tpu as pltpu


def _round_up(x: int, m: int) -> int:
    return ((x + m - 1) // m) * m


def _cdiv(a: int, b: int) -> int:
    return (a + b - 1) // b


def _largest_tile(total: int, unit: int, target: int) -> int:
    """Largest multiple of `unit` that divides `total` and is <= max(target, unit)."""
    n = total // unit
    cap = max(target // unit, 1)
    best = 1
    for d in range(1, n + 1):
        if n % d == 0 and d <= cap:
            best = d
    return best * unit


# --------------------------------------------------------------------------
# One-time parameter formatting (hoisted out of the per-call path).
# --------------------------------------------------------------------------
class LinearParams(NamedTuple):
    w_t: jax.Array       # (K_pad, N_pad) bf16, pre-transposed + zero-padded
    bias: jax.Array      # (1, N_pad) f32, zero-padded
    in_features: int
    out_features: int


def prepare_linear_params(weight: jax.Array, bias: jax.Array) -> LinearParams:
    """Format weight/bias once (at init / load time, not per forward).

    Transposes to (in_features, out_features) so the kernel uses a standard
    row-by-column contraction (no per-tile XLU transpose), casts to bf16
    (MXU-native, halves weight HBM bytes) and zero-pads to multiples of 128.
    """
    out_f, in_f = weight.shape
    K_pad = _round_up(in_f, 128)
    N_pad = _round_up(out_f, 128)
    w_t = weight.T.astype(jnp.bfloat16)                       # (in, out)
    w_t = jnp.pad(w_t, ((0, K_pad - in_f), (0, N_pad - out_f)))
    b = jnp.pad(bias.astype(jnp.float32), (0, N_pad - out_f)).reshape(1, N_pad)
    return LinearParams(w_t, b, in_f, out_f)


# --------------------------------------------------------------------------
# Kernels
# --------------------------------------------------------------------------
def _prep_kernel(x_ref, o_ref, *,
                 input_clip: Optional[float],
                 input_nonlin: Optional[List[float]]):
    """Elementwise pre-pass: clip + polynomial nonlinearity + cast to bf16."""
    x = x_ref[...].astype(jnp.float32)
    if input_clip is not None:
        clip = jnp.float32(input_clip)
        x = jnp.maximum(jnp.minimum(x, clip), -clip)
    if input_nonlin is not None:
        coeffs = [jnp.float32(c) for c in input_nonlin]
        if len(coeffs) == 0:
            # Empty coefficient list => empty sum => zero input (matches torch).
            x = jnp.zeros_like(x)
        else:
            poly = jnp.full_like(x, coeffs[-1])       # Horner evaluation
            for c in reversed(coeffs[:-1]):
                poly = poly * x + c
            x = poly
    o_ref[...] = x.astype(o_ref.dtype)


def _matmul_kernel(x_ref, w_ref, b_ref, o_ref):
    """One (tm, tn) output tile, accumulated over the (innermost) K grid axis.

    x_ref : (tm, tk) bf16   pre-processed activations tile
    w_ref : (tk, tn) bf16   pre-transposed weight tile (standard contraction)
    b_ref : (1,  tn) f32    bias tile
    o_ref : (tm, tn) f32    output tile -- block index (i, j) is constant
                            across k, so it stays resident in VMEM and is used
                            directly as the accumulator (no scratch needed).

    NOTE: this zero-init / accumulate / finalize pattern requires K to be the
    innermost ("arbitrary") grid axis. Do not reorder the grid.
    """
    k = pl.program_id(2)

    @pl.when(k == 0)
    def _():
        o_ref[...] = jnp.zeros_like(o_ref)

    o_ref[...] += jnp.dot(x_ref[...], w_ref[...],
                          preferred_element_type=jnp.float32)

    @pl.when(k == pl.num_programs(2) - 1)
    def _():
        o_ref[...] += b_ref[...]


# --------------------------------------------------------------------------
# Forward wrapper
# --------------------------------------------------------------------------
def linear_forward(
    x: jax.Array,
    params: LinearParams,
    *,
    input_clip: Optional[float] = None,
    input_nonlin: Optional[List[float]] = None,
    out_noise: Optional[float] = None,
    noise_key: Optional[jax.Array] = None,
    tm_target: int = 512,
    tn_target: int = 512,
    tk_target: int = 2048,
) -> jax.Array:
    B, in_f = x.shape
    assert in_f == params.in_features, "weight / input feature mismatch"
    K_pad, N_pad = params.w_t.shape
    out_f = params.out_features

    # ---- tile sizes -------------------------------------------------------
    # tm: balanced across M blocks to minimize zero-padded-row waste
    # (e.g. B=300 -> tm=152, B_pad=304 instead of tm=256, B_pad=512).
    if B <= tm_target:
        tm = _round_up(B, 8)
    else:
        tm = _round_up(_cdiv(B, _cdiv(B, tm_target)), 8)
    B_pad = _round_up(B, tm)

    tk = _largest_tile(K_pad, 128, tk_target)
    tn = _largest_tile(N_pad, 128, tn_target)
    # v7x has 2 TensorCores: if there is only one M block, expose >= 2 parallel
    # N blocks (when out_features allows) so the second core is not idle.
    if B_pad // tm == 1 and N_pad // tn == 1 and N_pad // 128 >= 2:
        tn = _largest_tile(N_pad, 128, N_pad // 2)

    # ---- activation pre-pass (one HBM pass, output bf16) ------------------
    # Zero-padding is sound: padded K lanes of x may become the poly constant,
    # but the matching padded weight *rows* are zero so they contribute nothing;
    # padded M rows / N cols are sliced off at the end.
    xf = x.astype(jnp.float32)
    if (B_pad, K_pad) != (B, in_f):
        xf = jnp.pad(xf, ((0, B_pad - B), (0, K_pad - in_f)))

    if input_clip is not None or input_nonlin is not None:
        xb = pl.pallas_call(
            partial(_prep_kernel, input_clip=input_clip,
                    input_nonlin=input_nonlin),
            out_shape=jax.ShapeDtypeStruct((B_pad, K_pad), jnp.bfloat16),
            grid_spec=pltpu.PrefetchScalarGridSpec(
                num_scalar_prefetch=0,
                grid=(B_pad // tm, K_pad // tk),
                in_specs=[pl.BlockSpec((tm, tk), lambda i, j: (i, j))],
                out_specs=pl.BlockSpec((tm, tk), lambda i, j: (i, j)),
            ),
            compiler_params=pltpu.CompilerParams(
                dimension_semantics=("parallel", "parallel")),
        )(xf)
    else:
        xb = xf.astype(jnp.bfloat16)

    # ---- tiled matmul + bias ----------------------------------------------
    grid = (B_pad // tm, N_pad // tn, K_pad // tk)

    # Double-buffered VMEM footprint (bf16 x & W, f32 out + bias); cap the
    # scoped limit well under v7x's 64 MiB physical VMEM.
    vmem_bytes = 2 * (tm * tk * 2 + tk * tn * 2 + tn * 4) + 2 * (tm * tn * 4)
    vmem_limit = min(max(2 * vmem_bytes, 32 * 1024 * 1024), 56 * 1024 * 1024)

    out = pl.pallas_call(
        _matmul_kernel,
        out_shape=jax.ShapeDtypeStruct((B_pad, N_pad), jnp.float32),
        grid_spec=pltpu.PrefetchScalarGridSpec(
            num_scalar_prefetch=0,
            grid=grid,
            in_specs=[
                pl.BlockSpec((tm, tk), lambda i, j, k: (i, k)),   # x tile
                pl.BlockSpec((tk, tn), lambda i, j, k: (k, j)),   # W^T tile
                pl.BlockSpec((1, tn), lambda i, j, k: (0, j)),    # bias tile
            ],
            out_specs=pl.BlockSpec((tm, tn), lambda i, j, k: (i, j)),
        ),
        compiler_params=pltpu.CompilerParams(
            dimension_semantics=("parallel", "parallel", "arbitrary"),
            vmem_limit_bytes=vmem_limit,
        ),
    )(xb, params.w_t, params.bias)

    out = out[:B, :out_f]

    if out_noise is not None:
        # TODO(synk): could be fused into the last-K epilogue with
        # pltpu.prng_seed / pltpu.prng_random_bits; left in plain JAX since it
        # is stochastic and cannot match torch's RNG stream anyway.
        if noise_key is None:
            noise_key = jax.random.PRNGKey(0)
        out = out + out_noise * jax.random.normal(noise_key, out.shape, out.dtype)

    return out


# --------------------------------------------------------------------------
# Demo / self-test
# --------------------------------------------------------------------------
if __name__ == "__main__":
    key = jax.random.PRNGKey(0)
    kx, kw, kb = jax.random.split(key, 3)

    B, in_features, out_features = 8, 32, 16

    # Deterministic "kaiming_uniform_(nonlinearity='relu')" style init.
    gain = math.sqrt(2.0)
    w_bound = gain * math.sqrt(3.0 / in_features)
    weight = jax.random.uniform(
        kw, (out_features, in_features), jnp.float32, -w_bound, w_bound
    )
    b_bound = 1.0 / math.sqrt(in_features)
    bias = jax.random.uniform(kb, (out_features,), jnp.float32, -b_bound, b_bound)

    x = jax.random.normal(kx, (B, in_features), jnp.float32)

    input_clip = 0.5
    input_nonlin = [0.0, 1.0, 0.05]

    # Weight/bias formatting happens ONCE (hoisted out of the per-call path).
    params = prepare_linear_params(weight, bias)

    out = linear_forward(
        x, params, input_clip=input_clip, input_nonlin=input_nonlin
    )
    jax.block_until_ready(out)

    # Pure-JAX f32 reference (kernel matmul runs bf16 inputs / f32 accumulate,
    # so compare with a bf16-appropriate tolerance).
    xr = jnp.clip(x, -input_clip, input_clip)
    xr = sum(c * xr ** p for p, c in enumerate(input_nonlin))
    ref = xr @ weight.T + bias

    assert out.shape == (B, out_features)
    assert jnp.allclose(out, ref, atol=3e-2, rtol=3e-2), "mismatch vs reference"

    print("KERNEL_OK")
</pallas_src>

<mosaic_0001>
module attributes {stable_mosaic.version = 11 : i64} {
  func.func @_prep_kernel(%arg0: i32, %arg1: i32, %arg2: memref<8x128xf32, #tpu.memory_space<vmem>>, %arg3: memref<8x128xbf16, #tpu.memory_space<vmem>>) attributes {dimension_semantics = [#tpu.dimension_semantics<parallel>, #tpu.dimension_semantics<parallel>], iteration_bounds = array<i64: 1, 1>, scalar_prefetch = 0 : i64, scratch_operands = 0 : i64, tpu.core_type = #tpu.core_type<tc>, window_params = [{transform_indices = @transform_0, window_bounds = array<i64: 8, 128>}, {transform_indices = @transform_1, window_bounds = array<i64: 8, 128>}]} {
    %c0 = arith.constant 0 : index
    %c0_0 = arith.constant 0 : index
    %0 = vector.load %arg2[%c0, %c0_0] : memref<8x128xf32, #tpu.memory_space<vmem>>, vector<8x128xf32>
    %cst = arith.constant 5.000000e-01 : f32
    %1 = vector.broadcast %cst : f32 to vector<8x128xf32>
    %2 = arith.minimumf %0, %1 : vector<8x128xf32>
    %cst_1 = arith.constant 0.000000e+00 : f32
    %cst_2 = arith.constant 5.000000e-01 : f32
    %3 = arith.subf %cst_1, %cst_2 : f32
    %4 = vector.broadcast %3 : f32 to vector<8x128xf32>
    %5 = arith.maximumf %2, %4 : vector<8x128xf32>
    %cst_3 = arith.constant 5.000000e-02 : f32
    %6 = vector.broadcast %cst_3 : f32 to vector<8x128xf32>
    %7 = arith.mulf %6, %5 : vector<8x128xf32>
    %cst_4 = arith.constant 1.000000e+00 : f32
    %8 = vector.broadcast %cst_4 : f32 to vector<8x128xf32>
    %9 = arith.addf %7, %8 : vector<8x128xf32>
    %10 = arith.mulf %9, %5 : vector<8x128xf32>
    %cst_5 = arith.constant 0.000000e+00 : f32
    %11 = vector.broadcast %cst_5 : f32 to vector<8x128xf32>
    %12 = arith.addf %10, %11 : vector<8x128xf32>
    %13 = arith.truncf %12 : vector<8x128xf32> to vector<8x128xbf16>
    %c0_6 = arith.constant 0 : index
    %c0_7 = arith.constant 0 : index
    %14 = vector.load %arg3[%c0_6, %c0_7] : memref<8x128xbf16, #tpu.memory_space<vmem>>, vector<8x128xbf16>
    tpu.vector_store %arg3[%c0_6, %c0_7], %13 {strides = array<i32>} : memref<8x128xbf16, #tpu.memory_space<vmem>>, vector<8x128xbf16>,
    return
  }
  func.func @transform_0(%arg0: i32, %arg1: i32) -> (i32, i32) {
    %c0_i32 = arith.constant 0 : i32
    return %arg0, %arg1 : i32, i32
  }
  func.func @transform_1(%arg0: i32, %arg1: i32) -> (i32, i32) {
    %c0_i32 = arith.constant 0 : i32
    return %arg0, %arg1 : i32, i32
  }
}

</mosaic_0001>

<bundles_post_ra>
// kernel: tpu_custom_call.1
= control target key start
LH: loop header
LB: loop body
LE: loop exit
PB: predicated region body
PF: predicated region fallthrough
CT: control target
= control target key end

     0   :  { %6 = vsyncpa [#allocation3], 0  ;;  %s110_s0 = inlined_call_operand.hbm [shape: f32[8,128], index: 0, kind: input, shape index: {}]   ;;  %s111_s1 = inlined_call_operand.hbm [shape: bf16[8,128], index: 1, kind: output, shape index: {}]  }
   0x1   :  { %7 = vsyncpa [#allocation4], 0  ;;  %s92_s6 = smov [#allocation2]  }
   0x2   :  { %s14_s7 = sshll.u32 %s92_s6, 4  ;;  %s15_s7 = int_to_ptr.vmem [resolvable:$true] %s14_s7 }
   0x3   :  { %s56_s8 = scalar_lea.vmem %s15_s7, 128  ;;  %p61_p1 = scmp.lt.s32.totalorder %s15_s7, %s15_s7 }
   0x4   :  { %p57_p0 = scmp.ne.s32.totalorder %s15_s7, %s56_s8  ;;  %p62_p2 = scmp.lt.s32.totalorder %s56_s8, %s56_s8 }
   0x6   :  { %p63_p3 = por %p62_p2, %p61_p1 }
   0x8   :  { %p64_p4 = pnand %p63_p3, %p57_p0 }
   0xa   :  { %67 = shalt.err (!%p64_p4)
}
   0xb   :  { %17 = dma.hbm_to_vmem [thread:$0]  %s110_s0, 128, %s15_s7, [#allocation3]  }
   0xc   :  { %88 = dma.done.wait [#allocation3], 128  }
   0xd   :  { %89 = vsyncadd [#allocation3], 4294967168  ;;  %v21_v0 = vld [vmem:[#allocation2] sm:$0xff]  ;;  %s93_s11 = smov [#allocation5]  }
   0xe   :  { %v45_v1 = vclamps-f32 %v21_v0, 0.5  ;;  %s36_s12 = sshll.u32 %s93_s11, 4  ;;  %s37_s12 = int_to_ptr.vmem [resolvable:$true] %s36_s12 }
   0xf   :  { %s68_s13 = scalar_lea.vmem %s37_s12, 64  ;;  %p73_p6 = scmp.lt.s32.totalorder %s37_s12, %s37_s12 }
  0x10   :  { %v24_v2 = vmul.f32 0.05, %v45_v1  ;;  %p69_p5 = scmp.ne.s32.totalorder %s37_s12, %s68_s13  ;;  %p74_p7 = scmp.lt.s32.totalorder %s68_s13, %s68_s13 }
  0x12   :  { %v25_v3 = vadd.f32 1.0, %v24_v2  ;;  %p75_p8 = por %p74_p7, %p73_p6 }
  0x14   :  { %v26_v4 = vmul.f32 %v45_v1, %v25_v3  ;;  %p76_p9 = pnand %p75_p8, %p69_p5 }
  0x16   :  { %v28_v5 = vpack.c.bf16 %v26_v4, %v26_v4 }
  0x18   :  { %29 = vst [vmem:[#allocation5] sm:$0xf] %v28_v5 }
  0x19   :  { %79 = shalt.err (!%p76_p9)
}
  0x1a   :  { %39 = dma.vmem_to_hbm [thread:$0]  %s37_s12, 64, %s111_s1, [#allocation4]  }
  0x1b   :  { %90 = dma.done.wait [#allocation4], 64  }
  0x1c   :  { %91 = vsyncadd [#allocation4], 4294967232 }
  0x1d   :  { %43 = vsyncpa [#allocation3], 1 }
  0x1e   :  { %44 = vsyncpa [#allocation4], 1 }

</bundles_post_ra>
